<compile_context>
chip_gen: v5e
topology: v5e:2x2
jax: 0.10.0
libtpu: 0.0.40
codegen_flags: <defaults>
</compile_context>

<pallas_src>
import jax
import jax.numpy as jnp
from jax.experimental import pallas as pl
from jax.experimental.pallas import tpu as pltpu

EPS = 1e-5


# ---------------------------------------------------------------------------
# In-kernel helpers (operate on loaded VMEM values)
# ---------------------------------------------------------------------------
def _layer_norm(x, gamma, beta):
    mu = jnp.mean(x, axis=-1, keepdims=True)
    var = jnp.mean((x - mu) ** 2, axis=-1, keepdims=True)
    return (x - mu) * jax.lax.rsqrt(var + EPS) * gamma + beta


def _relu(x):
    return jnp.maximum(x, 0.0)


# ---------------------------------------------------------------------------
# Fused kernel: (folded GAP+BN+pool) -> middle -> comb -> final
# ---------------------------------------------------------------------------
def fusion_kernel(img_ref, text_ref,
                  w_pool_ref, w_mid_ref, w_comb_ref, w_fin_ref, vecs_ref,
                  out_ref):
    f32 = jnp.float32
    tb = img_ref.shape[1]            # batch tile (multiple of 8)
    chw = img_ref.shape[2]
    text_f = text_ref.shape[1]
    img_f = w_pool_ref.shape[1]
    mid = w_mid_ref.shape[1]
    num_cls = w_fin_ref.shape[1]

    # -- unpack the packed small-vector parameters (static slices) --
    vecs = vecs_ref[...]
    b_pool   = vecs[0:1, :img_f]     # pool bias with im_norm folded in
    b_mid    = vecs[1:2, :mid]
    ln_mid_g = vecs[2:3, :mid]
    ln_mid_b = vecs[3:4, :mid]
    b_comb   = vecs[4:5, :mid]       # comb bias with text_norm folded in
    ln_cmb_g = vecs[5:6, :mid]
    ln_cmb_b = vecs[6:7, :mid]
    b_fin    = vecs[7:8, :num_cls]

    # --- stand-in image backbone + im_norm (GAP and eval-BN folded into matmul) ---
    # Both images stacked: one matmul / one elementwise pass over 2*TB rows.
    imgs = img_ref[...].reshape(2 * tb, chw)                       # (2TB, C*H*W)
    im = jnp.dot(imgs, w_pool_ref[...], preferred_element_type=f32) + b_pool

    # --- middle_layer: Dropout(id) -> Linear -> LayerNorm -> ReLU (stacked) ---
    obj = _relu(_layer_norm(
        jnp.dot(im, w_mid_ref[...], preferred_element_type=f32) + b_mid,
        ln_mid_g, ln_mid_b))                                       # (2TB, MID)

    # --- comb_layer on cat([text, obj]) (concat folded into split weights) ---
    # text projection computed ONCE (text_norm folded into its weight/bias);
    # obj projection computed once on the stacked 2*TB rows.
    w_comb = w_comb_ref[...]
    txt_proj = jnp.dot(text_ref[...], w_comb[:text_f, :],
                       preferred_element_type=f32) + b_comb        # (TB, MID)
    obj_proj = jnp.dot(obj, w_comb[text_f:, :],
                       preferred_element_type=f32)                 # (2TB, MID)
    pre = obj_proj + jnp.concatenate([txt_proj, txt_proj], axis=0)
    feat = _relu(_layer_norm(pre, ln_cmb_g, ln_cmb_b))             # (2TB, MID)

    # --- final_layer on cat([features1, features2]) (single K=2*MID matmul) ---
    ff = jnp.concatenate([feat[:tb, :], feat[tb:, :]], axis=-1)    # (TB, 2*MID)
    out_ref[...] = jnp.dot(ff, w_fin_ref[...],
                           preferred_element_type=f32) + b_fin


# ---------------------------------------------------------------------------
# Wrapper (glue: reshape/stack/pad + batch grid; mirrors torch forward args)
# ---------------------------------------------------------------------------
def _round_up(x, m):
    return ((x + m - 1) // m) * m


def _choose_batch_tile(batch, chw, vmem_budget_bytes=8 << 20):
    # 2 stacked images x 2 pipeline buffers x tb rows x chw x 4 B under budget
    # (conservative so it also fits v5e's 16 MiB / v7x's halved VMEM defaults).
    per_row_bytes = 2 * 2 * chw * 4
    tb = vmem_budget_bytes // max(per_row_bytes, 1)
    tb = max(8, min(256, (tb // 8) * 8))
    tb = min(tb, _round_up(batch, 8))
    return tb


def fusion_forward(folded, text_features, image1, video1, audio1,
                   image2, video2, audio2):
    # audio_model = video_model = None in this configuration -> those inputs
    # are unused, exactly as in the PyTorch forward.
    del video1, audio1, video2, audio2

    B = text_features.shape[0]
    img1 = image1.reshape(B, -1)                  # (B, C*H*W)
    img2 = image2.reshape(B, -1)
    chw = img1.shape[1]
    text_f = text_features.shape[1]
    num_cls = folded["w_fin"].shape[1]

    tb = _choose_batch_tile(B, chw)
    b_pad = _round_up(B, tb)
    n_tiles = b_pad // tb

    def pad_b(x):
        return x if b_pad == B else jnp.pad(x, ((0, b_pad - B), (0, 0)))

    imgs = jnp.stack([pad_b(img1), pad_b(img2)], axis=0)   # (2, b_pad, chw)
    text = pad_b(text_features)                            # (b_pad, text_f)

    out = pl.pallas_call(
        fusion_kernel,
        out_shape=jax.ShapeDtypeStruct((b_pad, num_cls), jnp.float32),
        grid=(n_tiles,),
        in_specs=[
            pl.BlockSpec((2, tb, chw), lambda i: (0, i, 0)),
            pl.BlockSpec((tb, text_f), lambda i: (i, 0)),
            pl.BlockSpec(folded["w_pool_big"].shape, lambda i: (0, 0)),
            pl.BlockSpec(folded["w_mid"].shape, lambda i: (0, 0)),
            pl.BlockSpec(folded["w_comb"].shape, lambda i: (0, 0)),
            pl.BlockSpec(folded["w_fin"].shape, lambda i: (0, 0)),
            pl.BlockSpec(folded["vecs"].shape, lambda i: (0, 0)),
        ],
        out_specs=pl.BlockSpec((tb, num_cls), lambda i: (i, 0)),
        compiler_params=pltpu.CompilerParams(
            dimension_semantics=("parallel",)),
    )(imgs, text, folded["w_pool_big"], folded["w_mid"],
      folded["w_comb"], folded["w_fin"], folded["vecs"])

    return out[:B]


# ---------------------------------------------------------------------------
# Deterministic parameter construction (raw, PyTorch-style)
# ---------------------------------------------------------------------------
def make_params(key, c_in, img_feats, text_feats, mid_dim, num_cls):
    ks = jax.random.split(key, 13)

    def normal(k, shape, scale=0.05):
        return jax.random.normal(k, shape, dtype=jnp.float32) * scale

    def bn_pack(k, feats):
        k1, k2, k3, k4 = jax.random.split(k, 4)
        mean = normal(k1, (1, feats), 0.1)
        var = 1.0 + 0.1 * jax.nn.sigmoid(jax.random.normal(k2, (1, feats)))
        gamma = 1.0 + normal(k3, (1, feats), 0.1)
        beta = normal(k4, (1, feats), 0.1)
        return jnp.concatenate([mean, var, gamma, beta], axis=0)  # (4, F)

    def ln_pack(k, feats):
        k1, k2 = jax.random.split(k)
        gamma = 1.0 + normal(k1, (1, feats), 0.1)
        beta = normal(k2, (1, feats), 0.1)
        return jnp.concatenate([gamma, beta], axis=0)             # (2, F)

    return {
        "w_pool":  normal(ks[0], (c_in, img_feats)),
        "b_pool":  normal(ks[1], (1, img_feats)),
        "im_bn":   bn_pack(ks[2], img_feats),
        "text_bn": bn_pack(ks[3], text_feats),
        "w_mid":   normal(ks[4], (img_feats, mid_dim)),
        "b_mid":   normal(ks[5], (1, mid_dim)),
        "ln_mid":  ln_pack(ks[6], mid_dim),
        "w_comb":  normal(ks[7], (text_feats + mid_dim, mid_dim)),
        "b_comb":  normal(ks[8], (1, mid_dim)),
        "ln_comb": ln_pack(ks[9], mid_dim),
        "w_fin":   normal(ks[10], (2 * mid_dim, num_cls)),
        "b_fin":   normal(ks[11], (1, num_cls)),
    }


# ---------------------------------------------------------------------------
# One-time constant folding: eval-BN -> adjacent linears, GAP -> pool matmul,
# and packing of all tiny per-feature vectors into one (8, VW) array.
# ---------------------------------------------------------------------------
def fold_params(p, hw):
    img_f = p["w_pool"].shape[1]
    text_f = p["text_bn"].shape[1]
    mid = p["w_mid"].shape[1]
    num_cls = p["w_fin"].shape[1]

    # im_norm (eval BN) folded into the pool linear (BN follows it).
    mean, var, gamma, beta = (p["im_bn"][i:i + 1] for i in range(4))
    s_im = gamma * jax.lax.rsqrt(var + EPS)               # (1, img_f)
    w_pool_bn = p["w_pool"] * s_im
    b_pool_bn = (p["b_pool"] - mean) * s_im + beta

    # global-average-pool folded into the matmul: (C, F) -> (C*HW, F) / HW
    w_pool_big = jnp.repeat(w_pool_bn, hw, axis=0) / float(hw)

    # text_norm (eval BN) folded into the comb linear (BN precedes it).
    mean_t, var_t, gamma_t, beta_t = (p["text_bn"][i:i + 1] for i in range(4))
    s_t = gamma_t * jax.lax.rsqrt(var_t + EPS)            # (1, text_f)
    t_t = beta_t - mean_t * s_t
    w_comb_t = p["w_comb"][:text_f]
    w_comb_o = p["w_comb"][text_f:]
    w_comb_fold = jnp.concatenate([w_comb_t * s_t.T, w_comb_o], axis=0)
    b_comb_fold = p["b_comb"] + t_t @ w_comb_t

    # pack the small per-feature vectors into a single (8, VW) VMEM input
    vw = max(img_f, mid, num_cls)

    def row(v):
        v = v.reshape(1, -1)
        return jnp.pad(v, ((0, 0), (0, vw - v.shape[1])))

    vecs = jnp.concatenate([
        row(b_pool_bn), row(p["b_mid"]),
        row(p["ln_mid"][0]), row(p["ln_mid"][1]),
        row(b_comb_fold),
        row(p["ln_comb"][0]), row(p["ln_comb"][1]),
        row(p["b_fin"]),
    ], axis=0)                                            # (8, VW)

    return {
        "w_pool_big": w_pool_big,     # (C*HW, img_f)
        "w_mid": p["w_mid"],          # (img_f, mid)
        "w_comb": w_comb_fold,        # (text_f + mid, mid)
        "w_fin": p["w_fin"],          # (2*mid, num_cls)
        "vecs": vecs,                 # (8, VW)
    }


# ---------------------------------------------------------------------------
# Pure-JAX reference on the RAW (unfolded) parameters — also validates folding
# ---------------------------------------------------------------------------
def reference_forward(p, text, img1, img2):
    def bn(x, q):
        return (x - q[0:1]) / jnp.sqrt(q[1:2] + EPS) * q[2:3] + q[3:4]

    def ln(x, q):
        mu = x.mean(-1, keepdims=True)
        var = ((x - mu) ** 2).mean(-1, keepdims=True)
        return (x - mu) / jnp.sqrt(var + EPS) * q[0:1] + q[1:2]

    def backbone(img):
        pooled = img.reshape(img.shape[0], img.shape[1], -1).mean(-1)
        return pooled @ p["w_pool"] + p["b_pool"]

    def middle(x):
        return jax.nn.relu(ln(x @ p["w_mid"] + p["b_mid"], p["ln_mid"]))

    def comb(t, o):
        pre = jnp.concatenate([t, o], axis=-1) @ p["w_comb"] + p["b_comb"]
        return jax.nn.relu(ln(pre, p["ln_comb"]))

    im1 = bn(backbone(img1), p["im_bn"])
    im2 = bn(backbone(img2), p["im_bn"])
    obj1, obj2 = middle(im1), middle(im2)
    txt = bn(text, p["text_bn"])
    f1, f2 = comb(txt, obj1), comb(txt, obj2)
    return jnp.concatenate([f1, f2], axis=-1) @ p["w_fin"] + p["b_fin"]


if __name__ == "__main__":
    B, C, H, W = 2, 3, 16, 16
    IMG_FEATS, TEXT_FEATS, MID_DIM, NUM_CLS = 32, 32, 64, 1

    key = jax.random.PRNGKey(0)
    k_params, k_txt, k_i1, k_i2 = jax.random.split(key, 4)

    raw_params = make_params(k_params, C, IMG_FEATS, TEXT_FEATS, MID_DIM, NUM_CLS)
    folded_params = fold_params(raw_params, H * W)

    text_features = jax.random.normal(k_txt, (B, TEXT_FEATS), dtype=jnp.float32)
    image1 = jax.random.normal(k_i1, (B, C, H, W), dtype=jnp.float32)
    image2 = jax.random.normal(k_i2, (B, C, H, W), dtype=jnp.float32)

    out = fusion_forward(folded_params, text_features, image1, None, None,
                         image2, None, None)
    out = jax.block_until_ready(out)

    ref = reference_forward(raw_params, text_features, image1, image2)
    assert out.shape == (B, NUM_CLS), out.shape
    assert jnp.allclose(out, ref, atol=1e-3, rtol=1e-3), (out, ref)

    print("KERNEL_OK")
</pallas_src>

<mosaic_0001>
module attributes {stable_mosaic.version = 11 : i64} {
  func.func @fusion_kernel(%arg0: i32, %arg1: memref<2x8x768xf32, #tpu.memory_space<vmem>>, %arg2: memref<8x32xf32, #tpu.memory_space<vmem>>, %arg3: memref<768x32xf32, #tpu.memory_space<vmem>>, %arg4: memref<32x64xf32, #tpu.memory_space<vmem>>, %arg5: memref<96x64xf32, #tpu.memory_space<vmem>>, %arg6: memref<128x1xf32, #tpu.memory_space<vmem>>, %arg7: memref<8x64xf32, #tpu.memory_space<vmem>>, %arg8: memref<8x1xf32, #tpu.memory_space<vmem>>) attributes {dimension_semantics = [#tpu.dimension_semantics<parallel>], iteration_bounds = array<i64: 1>, scalar_prefetch = 0 : i64, scratch_operands = 0 : i64, tpu.core_type = #tpu.core_type<tc>, window_params = [{transform_indices = @transform_0, window_bounds = array<i64: 2, 8, 768>}, {transform_indices = @transform_1, window_bounds = array<i64: 8, 32>}, {pipeline_mode = #tpu.pipeline_mode<synchronous>, transform_indices = @transform_2, window_bounds = array<i64: 768, 32>}, {pipeline_mode = #tpu.pipeline_mode<synchronous>, transform_indices = @transform_3, window_bounds = array<i64: 32, 64>}, {pipeline_mode = #tpu.pipeline_mode<synchronous>, transform_indices = @transform_4, window_bounds = array<i64: 96, 64>}, {pipeline_mode = #tpu.pipeline_mode<synchronous>, transform_indices = @transform_5, window_bounds = array<i64: 128, 1>}, {pipeline_mode = #tpu.pipeline_mode<synchronous>, transform_indices = @transform_6, window_bounds = array<i64: 8, 64>}, {transform_indices = @transform_7, window_bounds = array<i64: 8, 1>}]} {
    %c0 = arith.constant 0 : index
    %c0_0 = arith.constant 0 : index
    %0 = vector.load %arg7[%c0, %c0_0] : memref<8x64xf32, #tpu.memory_space<vmem>>, vector<8x64xf32>
    %1 = vector.extract_strided_slice %0 {offsets = [0, 0], sizes = [1, 32], strides = [1, 1]} : vector<8x64xf32> to vector<1x32xf32>
    %2 = vector.extract_strided_slice %0 {offsets = [1, 0], sizes = [1, 64], strides = [1, 1]} : vector<8x64xf32> to vector<1x64xf32>
    %3 = vector.extract_strided_slice %0 {offsets = [2, 0], sizes = [1, 64], strides = [1, 1]} : vector<8x64xf32> to vector<1x64xf32>
    %4 = vector.extract_strided_slice %0 {offsets = [3, 0], sizes = [1, 64], strides = [1, 1]} : vector<8x64xf32> to vector<1x64xf32>
    %5 = vector.extract_strided_slice %0 {offsets = [4, 0], sizes = [1, 64], strides = [1, 1]} : vector<8x64xf32> to vector<1x64xf32>
    %6 = vector.extract_strided_slice %0 {offsets = [5, 0], sizes = [1, 64], strides = [1, 1]} : vector<8x64xf32> to vector<1x64xf32>
    %7 = vector.extract_strided_slice %0 {offsets = [6, 0], sizes = [1, 64], strides = [1, 1]} : vector<8x64xf32> to vector<1x64xf32>
    %8 = vector.extract_strided_slice %0 {offsets = [7, 0], sizes = [1, 1], strides = [1, 1]} : vector<8x64xf32> to vector<1x1xf32>
    %c0_1 = arith.constant 0 : index
    %c0_2 = arith.constant 0 : index
    %c0_3 = arith.constant 0 : index
    %9 = vector.load %arg1[%c0_1, %c0_2, %c0_3] : memref<2x8x768xf32, #tpu.memory_space<vmem>>, vector<2x8x768xf32>
    %10 = vector.shape_cast %9 : vector<2x8x768xf32> to vector<16x768xf32>
    %c0_4 = arith.constant 0 : index
    %c0_5 = arith.constant 0 : index
    %11 = vector.load %arg3[%c0_4, %c0_5] : memref<768x32xf32, #tpu.memory_space<vmem>>, vector<768x32xf32>
    %cst = arith.constant dense<0.000000e+00> : vector<16x32xf32>
    %12 = tpu.matmul %10, %11, %cst {dimension_numbers = #tpu.dot_dimension_numbers<[1], [0], [0], [1], [0, 0, 1, 1], [], []>} : vector<16x768xf32>, vector<768x32xf32>, vector<16x32xf32> -> vector<16x32xf32>
    %13 = vector.broadcast %1 : vector<1x32xf32> to vector<16x32xf32>
    %14 = arith.addf %12, %13 : vector<16x32xf32>
    %c0_6 = arith.constant 0 : index
    %c0_7 = arith.constant 0 : index
    %15 = vector.load %arg4[%c0_6, %c0_7] : memref<32x64xf32, #tpu.memory_space<vmem>>, vector<32x64xf32>
    %cst_8 = arith.constant dense<0.000000e+00> : vector<16x64xf32>
    %16 = tpu.matmul %14, %15, %cst_8 {dimension_numbers = #tpu.dot_dimension_numbers<[1], [0], [0], [1], [0, 0, 1, 1], [], []>} : vector<16x32xf32>, vector<32x64xf32>, vector<16x64xf32> -> vector<16x64xf32>
    %17 = vector.broadcast %2 : vector<1x64xf32> to vector<16x64xf32>
    %18 = arith.addf %16, %17 : vector<16x64xf32>
    %cst_9 = arith.constant dense<0.000000e+00> : vector<16xf32>
    %19 = vector.multi_reduction <add>, %18, %cst_9 [1] : vector<16x64xf32> to vector<16xf32>
    %20 = vector.shape_cast %19 : vector<16xf32> to vector<16x1xf32>
    %cst_10 = arith.constant 6.400000e+01 : f32
    %21 = vector.broadcast %cst_10 : f32 to vector<16x1xf32>
    %22 = arith.divf %20, %21 : vector<16x1xf32>
    %23 = vector.broadcast %22 : vector<16x1xf32> to vector<16x64xf32>
    %24 = arith.subf %18, %23 : vector<16x64xf32>
    %25 = arith.mulf %24, %24 : vector<16x64xf32>
    %cst_11 = arith.constant dense<0.000000e+00> : vector<16xf32>
    %26 = vector.multi_reduction <add>, %25, %cst_11 [1] : vector<16x64xf32> to vector<16xf32>
    %27 = vector.shape_cast %26 : vector<16xf32> to vector<16x1xf32>
    %cst_12 = arith.constant 6.400000e+01 : f32
    %28 = vector.broadcast %cst_12 : f32 to vector<16x1xf32>
    %29 = arith.divf %27, %28 : vector<16x1xf32>
    %30 = vector.broadcast %22 : vector<16x1xf32> to vector<16x64xf32>
    %31 = arith.subf %18, %30 : vector<16x64xf32>
    %cst_13 = arith.constant 9.99999974E-6 : f32
    %32 = vector.broadcast %cst_13 : f32 to vector<16x1xf32>
    %33 = arith.addf %29, %32 : vector<16x1xf32>
    %34 = math.rsqrt %33 : vector<16x1xf32>
    %35 = vector.broadcast %34 : vector<16x1xf32> to vector<16x64xf32>
    %36 = arith.mulf %31, %35 : vector<16x64xf32>
    %37 = vector.broadcast %3 : vector<1x64xf32> to vector<16x64xf32>
    %38 = arith.mulf %36, %37 : vector<16x64xf32>
    %39 = vector.broadcast %4 : vector<1x64xf32> to vector<16x64xf32>
    %40 = arith.addf %38, %39 : vector<16x64xf32>
    %cst_14 = arith.constant 0.000000e+00 : f32
    %41 = vector.broadcast %cst_14 : f32 to vector<16x64xf32>
    %42 = arith.maximumf %40, %41 : vector<16x64xf32>
    %c0_15 = arith.constant 0 : index
    %c0_16 = arith.constant 0 : index
    %43 = vector.load %arg5[%c0_15, %c0_16] : memref<96x64xf32, #tpu.memory_space<vmem>>, vector<96x64xf32>
    %c0_17 = arith.constant 0 : index
    %c0_18 = arith.constant 0 : index
    %44 = vector.load %arg2[%c0_17, %c0_18] : memref<8x32xf32, #tpu.memory_space<vmem>>, vector<8x32xf32>
    %45 = vector.extract_strided_slice %43 {offsets = [0, 0], sizes = [32, 64], strides = [1, 1]} : vector<96x64xf32> to vector<32x64xf32>
    %cst_19 = arith.constant dense<0.000000e+00> : vector<8x64xf32>
    %46 = tpu.matmul %44, %45, %cst_19 {dimension_numbers = #tpu.dot_dimension_numbers<[1], [0], [0], [1], [0, 0, 1, 1], [], []>} : vector<8x32xf32>, vector<32x64xf32>, vector<8x64xf32> -> vector<8x64xf32>
    %47 = vector.broadcast %5 : vector<1x64xf32> to vector<8x64xf32>
    %48 = arith.addf %46, %47 : vector<8x64xf32>
    %49 = vector.extract_strided_slice %43 {offsets = [32, 0], sizes = [64, 64], strides = [1, 1]} : vector<96x64xf32> to vector<64x64xf32>
    %cst_20 = arith.constant dense<0.000000e+00> : vector<16x64xf32>
    %50 = tpu.matmul %42, %49, %cst_20 {dimension_numbers = #tpu.dot_dimension_numbers<[1], [0], [0], [1], [0, 0, 1, 1], [], []>} : vector<16x64xf32>, vector<64x64xf32>, vector<16x64xf32> -> vector<16x64xf32>
    %51 = tpu.concatenate %48, %48 in 0 : vector<8x64xf32>, vector<8x64xf32> -> vector<16x64xf32>
    %52 = arith.addf %50, %51 : vector<16x64xf32>
    %cst_21 = arith.constant dense<0.000000e+00> : vector<16xf32>
    %53 = vector.multi_reduction <add>, %52, %cst_21 [1] : vector<16x64xf32> to vector<16xf32>
    %54 = vector.shape_cast %53 : vector<16xf32> to vector<16x1xf32>
    %cst_22 = arith.constant 6.400000e+01 : f32
    %55 = vector.broadcast %cst_22 : f32 to vector<16x1xf32>
    %56 = arith.divf %54, %55 : vector<16x1xf32>
    %57 = vector.broadcast %56 : vector<16x1xf32> to vector<16x64xf32>
    %58 = arith.subf %52, %57 : vector<16x64xf32>
    %59 = arith.mulf %58, %58 : vector<16x64xf32>
    %cst_23 = arith.constant dense<0.000000e+00> : vector<16xf32>
    %60 = vector.multi_reduction <add>, %59, %cst_23 [1] : vector<16x64xf32> to vector<16xf32>
    %61 = vector.shape_cast %60 : vector<16xf32> to vector<16x1xf32>
    %cst_24 = arith.constant 6.400000e+01 : f32
    %62 = vector.broadcast %cst_24 : f32 to vector<16x1xf32>
    %63 = arith.divf %61, %62 : vector<16x1xf32>
    %64 = vector.broadcast %56 : vector<16x1xf32> to vector<16x64xf32>
    %65 = arith.subf %52, %64 : vector<16x64xf32>
    %cst_25 = arith.constant 9.99999974E-6 : f32
    %66 = vector.broadcast %cst_25 : f32 to vector<16x1xf32>
    %67 = arith.addf %63, %66 : vector<16x1xf32>
    %68 = math.rsqrt %67 : vector<16x1xf32>
    %69 = vector.broadcast %68 : vector<16x1xf32> to vector<16x64xf32>
    %70 = arith.mulf %65, %69 : vector<16x64xf32>
    %71 = vector.broadcast %6 : vector<1x64xf32> to vector<16x64xf32>
    %72 = arith.mulf %70, %71 : vector<16x64xf32>
    %73 = vector.broadcast %7 : vector<1x64xf32> to vector<16x64xf32>
    %74 = arith.addf %72, %73 : vector<16x64xf32>
    %cst_26 = arith.constant 0.000000e+00 : f32
    %75 = vector.broadcast %cst_26 : f32 to vector<16x64xf32>
    %76 = arith.maximumf %74, %75 : vector<16x64xf32>
    %77 = vector.extract_strided_slice %76 {offsets = [0, 0], sizes = [8, 64], strides = [1, 1]} : vector<16x64xf32> to vector<8x64xf32>
    %78 = vector.extract_strided_slice %76 {offsets = [8, 0], sizes = [8, 64], strides = [1, 1]} : vector<16x64xf32> to vector<8x64xf32>
    %79 = tpu.concatenate %77, %78 in 1 : vector<8x64xf32>, vector<8x64xf32> -> vector<8x128xf32>
    %c0_27 = arith.constant 0 : index
    %c0_28 = arith.constant 0 : index
    %80 = vector.load %arg6[%c0_27, %c0_28] : memref<128x1xf32, #tpu.memory_space<vmem>>, vector<128x1xf32>
    %cst_29 = arith.constant dense<0.000000e+00> : vector<8x1xf32>
    %81 = tpu.matmul %79, %80, %cst_29 {dimension_numbers = #tpu.dot_dimension_numbers<[1], [0], [0], [1], [0, 0, 1, 1], [], []>} : vector<8x128xf32>, vector<128x1xf32>, vector<8x1xf32> -> vector<8x1xf32>
    %82 = vector.broadcast %8 : vector<1x1xf32> to vector<8x1xf32>
    %83 = arith.addf %81, %82 : vector<8x1xf32>
    %c0_30 = arith.constant 0 : index
    %c0_31 = arith.constant 0 : index
    %84 = vector.load %arg8[%c0_30, %c0_31] : memref<8x1xf32, #tpu.memory_space<vmem>>, vector<8x1xf32>
    tpu.vector_store %arg8[%c0_30, %c0_31], %83 {strides = array<i32>} : memref<8x1xf32, #tpu.memory_space<vmem>>, vector<8x1xf32>,
    return
  }
  func.func @transform_0(%arg0: i32) -> (i32, i32, i32) {
    %c0_i32 = arith.constant 0 : i32
    %c0_i32_0 = arith.constant 0 : i32
    %c0_i32_1 = arith.constant 0 : i32
    return %c0_i32, %arg0, %c0_i32_0 : i32, i32, i32
  }
  func.func @transform_1(%arg0: i32) -> (i32, i32) {
    %c0_i32 = arith.constant 0 : i32
    %c0_i32_0 = arith.constant 0 : i32
    return %arg0, %c0_i32 : i32, i32
  }
  func.func @transform_2(%arg0: i32) -> (i32, i32) {
    %c0_i32 = arith.constant 0 : i32
    %c0_i32_0 = arith.constant 0 : i32
    %c0_i32_1 = arith.constant 0 : i32
    return %c0_i32, %c0_i32_0 : i32, i32
  }
  func.func @transform_3(%arg0: i32) -> (i32, i32) {
    %c0_i32 = arith.constant 0 : i32
    %c0_i32_0 = arith.constant 0 : i32
    %c0_i32_1 = arith.constant 0 : i32
    return %c0_i32, %c0_i32_0 : i32, i32
  }
  func.func @transform_4(%arg0: i32) -> (i32, i32) {
    %c0_i32 = arith.constant 0 : i32
    %c0_i32_0 = arith.constant 0 : i32
    %c0_i32_1 = arith.constant 0 : i32
    return %c0_i32, %c0_i32_0 : i32, i32
  }
  func.func @transform_5(%arg0: i32) -> (i32, i32) {
    %c0_i32 = arith.constant 0 : i32
    %c0_i32_0 = arith.constant 0 : i32
    %c0_i32_1 = arith.constant 0 : i32
    return %c0_i32, %c0_i32_0 : i32, i32
  }
  func.func @transform_6(%arg0: i32) -> (i32, i32) {
    %c0_i32 = arith.constant 0 : i32
    %c0_i32_0 = arith.constant 0 : i32
    %c0_i32_1 = arith.constant 0 : i32
    return %c0_i32, %c0_i32_0 : i32, i32
  }
  func.func @transform_7(%arg0: i32) -> (i32, i32) {
    %c0_i32 = arith.constant 0 : i32
    %c0_i32_0 = arith.constant 0 : i32
    return %arg0, %c0_i32 : i32, i32
  }
}

</mosaic_0001>

<bundles_post_ra>
// kernel: tpu_custom_call.1
= control target key start
LH: loop header
LB: loop body
LE: loop exit
PB: predicated region body
PF: predicated region fallthrough
CT: control target
= control target key end

     0   :  { %vm279_vm0 = vcmask 261120   ;;  %vm309_vm1 = vcmask 523264   ;;  %vm529_vm15 = vcmask 7168   ;;  %s1067_s2 = inlined_call_operand.vmem [shape: f32[768,32], index: 2, kind: input, shape index: {}]   ;;  %s1068_s0 = inlined_call_operand.vmem [shape: f32[2,8,768], index: 0, kind: input, shape index: {}]   ;;  %s1069_s3 = inlined_call_operand.vmem [shape: f32[32,64], index: 3, kind: input, shape index: {}]   ;;  %s1070_s6 = inlined_call_operand.vmem [shape: f32[8,64], index: 6, kind: input, shape index: {}]   ;;  %s1071_s4 = inlined_call_operand.vmem [shape: f32[96,64], index: 4, kind: input, shape index: {}]   ;;  %s1072_s1 = inlined_call_operand.vmem [shape: f32[8,32], index: 1, kind: input, shape index: {}]   ;;  %s1073_s5 = inlined_call_operand.vmem [shape: f32[128,1], index: 5, kind: input, shape index: {}]   ;;  %s1074_s7 = inlined_call_operand.vmem [shape: f32[8,1], index: 7, kind: output, shape index: {}]  }
   0x1   :  { %v54_v0 = vld [vmem:[%s1067_s2 + $0x78] sm:$0xff]  ;;  %v53_v1 = vld [vmem:[%s1067_s2 + $0x70] sm:$0xff]  ;;  %v52_v4 = vld [vmem:[%s1067_s2 + $0x68] sm:$0xff] }
   0x2   :  { %v70_v2 = vld [vmem:[%s1067_s2 + $0xf8] sm:$0xff]  ;;  %136 = vmatpush.msra.mxu0 %v54_v0  ;;  %v69_v3 = vld [vmem:[%s1067_s2 + $0xf0] sm:$0xff]  ;;  %v68_v5 = vld [vmem:[%s1067_s2 + $0xe8] sm:$0xff] }
   0x3   :  { %159 = vmatpush.msra.mxu1 %v70_v2  ;;  %v51_v6 = vld [vmem:[%s1067_s2 + $0x60] sm:$0xff]  ;;  %v86_v8 = vld [vmem:[%s1067_s2 + $0x178] sm:$0xff]  ;;  %v85_v9 = vld [vmem:[%s1067_s2 + $0x170] sm:$0xff] }
   0x4   :  { %137 = vmatpush.msra.mxu0 %v53_v1  ;;  %v67_v7 = vld [vmem:[%s1067_s2 + $0xe0] sm:$0xff]  ;;  %v102_v10 = vld [vmem:[%s1067_s2 + $0x1f8] sm:$0xff]  ;;  %182 = vmatpush.msra.mxu2 %v86_v8  ;;  %v84_v13 = vld [vmem:[%s1067_s2 + $0x168] sm:$0xff] }
   0x5   :  { %160 = vmatpush.msra.mxu1 %v69_v3  ;;  %v50_v11 = vld [vmem:[%s1067_s2 + $0x58] sm:$0xff]  ;;  %205 = vmatpush.msra.mxu3 %v102_v10  ;;  %v101_v14 = vld [vmem:[%s1067_s2 + $0x1f0] sm:$0xff]  ;;  %v100_v17 = vld [vmem:[%s1067_s2 + $0x1e8] sm:$0xff] }
   0x6   :  { %138 = vmatpush.msra.mxu0 %v52_v4  ;;  %v66_v12 = vld [vmem:[%s1067_s2 + $0xd8] sm:$0xff]  ;;  %v49_v15 = vld [vmem:[%s1067_s2 + $0x50] sm:$0xff]  ;;  %183 = vmatpush.msra.mxu2 %v85_v9  ;;  %v83_v18 = vld [vmem:[%s1067_s2 + $0x160] sm:$0xff] }
   0x7   :  { %161 = vmatpush.msra.mxu1 %v68_v5  ;;  %v65_v16 = vld [vmem:[%s1067_s2 + $0xd0] sm:$0xff]  ;;  %206 = vmatpush.msra.mxu3 %v101_v14  ;;  %v99_v19 = vld [vmem:[%s1067_s2 + $0x1e0] sm:$0xff]  ;;  %v48_v20 = vld [vmem:[%s1067_s2 + $0x48] sm:$0xff] }
   0x8   :  { %139 = vmatpush.msra.mxu0 %v51_v6  ;;  %v64_v21 = vld [vmem:[%s1067_s2 + $0xc8] sm:$0xff]  ;;  %184 = vmatpush.msra.mxu2 %v84_v13  ;;  %v82_v22 = vld [vmem:[%s1067_s2 + $0x158] sm:$0xff]  ;;  %v47_v24 = vld [vmem:[%s1067_s2 + $0x40] sm:$0xff] }
   0x9   :  { %162 = vmatpush.msra.mxu1 %v67_v7  ;;  %207 = vmatpush.msra.mxu3 %v100_v17  ;;  %v98_v23 = vld [vmem:[%s1067_s2 + $0x1d8] sm:$0xff]  ;;  %v63_v25 = vld [vmem:[%s1067_s2 + $0xc0] sm:$0xff]  ;;  %v81_v26 = vld [vmem:[%s1067_s2 + $0x150] sm:$0xff] }
   0xa   :  { %140 = vmatpush.msra.mxu0 %v50_v11  ;;  %185 = vmatpush.msra.mxu2 %v83_v18  ;;  %v97_v27 = vld [vmem:[%s1067_s2 + $0x1d0] sm:$0xff]  ;;  %v46_v28 = vld [vmem:[%s1067_s2 + $0x38] sm:$0xff]  ;;  %v80_v30 = vld [vmem:[%s1067_s2 + $0x148] sm:$0xff] }
   0xb   :  { %163 = vmatpush.msra.mxu1 %v66_v12  ;;  %208 = vmatpush.msra.mxu3 %v99_v19  ;;  %v62_v29 = vld [vmem:[%s1067_s2 + $0xb8] sm:$0xff]  ;;  %v96_v31 = vld [vmem:[%s1067_s2 + $0x1c8] sm:$0xff]  ;;  %v45_v32 = vld [vmem:[%s1067_s2 + $0x30] sm:$0xff] }
   0xc   :  { %141 = vmatpush.msra.mxu0 %v49_v15  ;;  %186 = vmatpush.msra.mxu2 %v82_v22  ;;  %v61_v33 = vld [vmem:[%s1067_s2 + $0xb0] sm:$0xff]  ;;  %v79_v34 = vld [vmem:[%s1067_s2 + $0x140] sm:$0xff]  ;;  %v44_v36 = vld [vmem:[%s1067_s2 + $0x28] sm:$0xff] }
   0xd   :  { %164 = vmatpush.msra.mxu1 %v65_v16  ;;  %209 = vmatpush.msra.mxu3 %v98_v23  ;;  %v95_v35 = vld [vmem:[%s1067_s2 + $0x1c0] sm:$0xff]  ;;  %v60_v37 = vld [vmem:[%s1067_s2 + $0xa8] sm:$0xff]  ;;  %v78_v38 = vld [vmem:[%s1067_s2 + $0x138] sm:$0xff] }
   0xe   :  { %142 = vmatpush.msra.mxu0 %v48_v20  ;;  %187 = vmatpush.msra.mxu2 %v81_v26  ;;  %v94_v39 = vld [vmem:[%s1067_s2 + $0x1b8] sm:$0xff]  ;;  %v43_v40 = vld [vmem:[%s1067_s2 + $0x20] sm:$0xff]  ;;  %v77_v42 = vld [vmem:[%s1067_s2 + $0x130] sm:$0xff] }
   0xf   :  { %165 = vmatpush.msra.mxu1 %v64_v21  ;;  %210 = vmatpush.msra.mxu3 %v97_v27  ;;  %v59_v41 = vld [vmem:[%s1067_s2 + $0xa0] sm:$0xff]  ;;  %v93_v43 = vld [vmem:[%s1067_s2 + $0x1b0] sm:$0xff]  ;;  %v42_v44 = vld [vmem:[%s1067_s2 + $0x18] sm:$0xff] }
  0x10   :  { %143 = vmatpush.msra.mxu0 %v47_v24  ;;  %188 = vmatpush.msra.mxu2 %v80_v30  ;;  %v58_v45 = vld [vmem:[%s1067_s2 + $0x98] sm:$0xff]  ;;  %v76_v46 = vld [vmem:[%s1067_s2 + $0x128] sm:$0xff]  ;;  %v41_v48 = vld [vmem:[%s1067_s2 + $0x10] sm:$0xff] }
  0x11   :  { %166 = vmatpush.msra.mxu1 %v63_v25  ;;  %211 = vmatpush.msra.mxu3 %v96_v31  ;;  %v92_v47 = vld [vmem:[%s1067_s2 + $0x1a8] sm:$0xff]  ;;  %v57_v49 = vld [vmem:[%s1067_s2 + $0x90] sm:$0xff]  ;;  %v75_v50 = vld [vmem:[%s1067_s2 + $0x120] sm:$0xff] }
  0x12   :  { %144 = vmatpush.msra.mxu0 %v46_v28  ;;  %189 = vmatpush.msra.mxu2 %v79_v34  ;;  %v91_v51 = vld [vmem:[%s1067_s2 + $0x1a0] sm:$0xff]  ;;  %v40_v52 = vld [vmem:[%s1067_s2 + $0x8] sm:$0xff]  ;;  %v74_v54 = vld [vmem:[%s1067_s2 + $0x118] sm:$0xff] }
  0x13   :  { %167 = vmatpush.msra.mxu1 %v62_v29  ;;  %212 = vmatpush.msra.mxu3 %v95_v35  ;;  %v56_v53 = vld [vmem:[%s1067_s2 + $0x88] sm:$0xff]  ;;  %v90_v55 = vld [vmem:[%s1067_s2 + $0x198] sm:$0xff]  ;;  %v39_v56 = vld [vmem:[%s1067_s2] sm:$0xff] }
  0x14   :  { %145 = vmatpush.msra.mxu0 %v45_v32  ;;  %190 = vmatpush.msra.mxu2 %v78_v38  ;;  %v55_v57 = vld [vmem:[%s1067_s2 + $0x80] sm:$0xff]  ;;  %v118_v58 = vld [vmem:[%s1067_s2 + $0x278] sm:$0xff]  ;;  %v73_v60 = vld [vmem:[%s1067_s2 + $0x110] sm:$0xff] }
  0x15   :  { %168 = vmatpush.msra.mxu1 %v61_v33  ;;  %213 = vmatpush.msra.mxu3 %v94_v39  ;;  %v134_v59 = vld [vmem:[%s1067_s2 + $0x2f8] sm:$0xff]  ;;  %v89_v61 = vld [vmem:[%s1067_s2 + $0x190] sm:$0xff]  ;;  %v72_v0 = vld [vmem:[%s1067_s2 + $0x108] sm:$0xff] }
  0x16   :  { %146 = vmatpush.msra.mxu0 %v44_v36  ;;  %191 = vmatpush.msra.mxu2 %v77_v42  ;;  %v117_v62 = vld [vmem:[%s1067_s2 + $0x270] sm:$0xff]  ;;  %v88_v1 = vld [vmem:[%s1067_s2 + $0x188] sm:$0xff]  ;;  %v71_v4 = vld [vmem:[%s1067_s2 + $0x100] sm:$0xff] }
  0x17   :  { %169 = vmatpush.msra.mxu1 %v60_v37  ;;  %214 = vmatpush.msra.mxu3 %v93_v43  ;;  %v133_v63 = vld [vmem:[%s1067_s2 + $0x2f0] sm:$0xff]  ;;  %v116_v2 = vld [vmem:[%s1067_s2 + $0x268] sm:$0xff]  ;;  %v87_v5 = vld [vmem:[%s1067_s2 + $0x180] sm:$0xff] }
  0x18   :  { %147 = vmatpush.msra.mxu0 %v43_v40  ;;  %192 = vmatpush.msra.mxu2 %v76_v46  ;;  %v132_v3 = vld [vmem:[%s1067_s2 + $0x2e8] sm:$0xff]  ;;  %v115_v6 = vld [vmem:[%s1067_s2 + $0x260] sm:$0xff]  ;;  %v29_v8 = vld [vmem:[%s1068_s0 + $0x10] sm:$0xff] }
  0x19   :  { %170 = vmatpush.msra.mxu1 %v59_v41  ;;  %215 = vmatpush.msra.mxu3 %v92_v47  ;;  %v131_v7 = vld [vmem:[%s1067_s2 + $0x2e0] sm:$0xff]  ;;  %v114_v10 = vld [vmem:[%s1067_s2 + $0x258] sm:$0xff]  ;;  %v28_v13 = vld [vmem:[%s1068_s0 + $0x8] sm:$0xff] }
  0x1a   :  { %148 = vmatpush.msra.mxu0 %v42_v44  ;;  %193 = vmatpush.msra.mxu2 %v75_v50  ;;  %v27_v9 = vld [vmem:[%s1068_s0] sm:$0xff]  ;;  %v130_v11 = vld [vmem:[%s1067_s2 + $0x2d8] sm:$0xff]  ;;  %v113_v14 = vld [vmem:[%s1067_s2 + $0x250] sm:$0xff] }
  0x1b   :  { %171 = vmatpush.msra.mxu1 %v58_v45  ;;  %216 = vmatpush.msra.mxu3 %v91_v51  ;;  %v30_v12 = vld [vmem:[%s1068_s0 + $0x18] sm:$0xff]  ;;  %v129_v15 = vld [vmem:[%s1067_s2 + $0x2d0] sm:$0xff]  ;;  %v112_v16 = vld [vmem:[%s1067_s2 + $0x248] sm:$0xff] }
  0x1c   :  { %149 = vmatpush.msra.mxu0 %v41_v48  ;;  %194 = vmatpush.msra.mxu2 %v74_v54  ;;  %v128_v17 = vld [vmem:[%s1067_s2 + $0x2c8] sm:$0xff]  ;;  %v111_v18 = vld [vmem:[%s1067_s2 + $0x240] sm:$0xff]  ;;  %v33_v21 = vld [vmem:[%s1068_s0 + $0x30] sm:$0xff] }
  0x1d   :  { %172 = vmatpush.msra.mxu1 %v57_v49  ;;  %217 = vmatpush.msra.mxu3 %v90_v55  ;;  %v127_v19 = vld [vmem:[%s1067_s2 + $0x2c0] sm:$0xff]  ;;  %v110_v22 = vld [vmem:[%s1067_s2 + $0x238] sm:$0xff]  ;;  %v36_v24 = vld [vmem:[%s1068_s0 + $0x48] sm:$0xff] }
  0x1e   :  { %150 = vmatpush.msra.mxu0 %v40_v52  ;;  %195 = vmatpush.msra.mxu2 %v73_v60  ;;  %v35_v20 = vld [vmem:[%s1068_s0 + $0x40] sm:$0xff]  ;;  %v126_v23 = vld [vmem:[%s1067_s2 + $0x2b8] sm:$0xff]  ;;  %v109_v26 = vld [vmem:[%s1067_s2 + $0x230] sm:$0xff] }
  0x1f   :  { %173 = vmatpush.msra.mxu1 %v56_v53  ;;  %218 = vmatpush.msra.mxu3 %v89_v61  ;;  %v34_v25 = vld [vmem:[%s1068_s0 + $0x38] sm:$0xff]  ;;  %v125_v27 = vld [vmem:[%s1067_s2 + $0x2b0] sm:$0xff]  ;;  %v108_v28 = vld [vmem:[%s1067_s2 + $0x228] sm:$0xff] }
  0x20   :  { %151 = vmatpush.msra.mxu0 %v39_v56  ;;  %196 = vmatpush.msra.mxu2 %v72_v0  ;;  %v124_v29 = vld [vmem:[%s1067_s2 + $0x2a8] sm:$0xff]  ;;  %v107_v30 = vld [vmem:[%s1067_s2 + $0x220] sm:$0xff]  ;;  %v106_v32 = vld [vmem:[%s1067_s2 + $0x218] sm:$0xff] }
  0x21   :  { %174 = vmatpush.msra.mxu1 %v55_v57  ;;  %219 = vmatpush.msra.mxu3 %v88_v1  ;;  %v123_v31 = vld [vmem:[%s1067_s2 + $0x2a0] sm:$0xff]  ;;  %v122_v33 = vld [vmem:[%s1067_s2 + $0x298] sm:$0xff]  ;;  %v105_v34 = vld [vmem:[%s1067_s2 + $0x210] sm:$0xff] }
  0x22   :  { %228 = vmatpush.msrb.mxu0 %v118_v58  ;;  %197 = vmatpush.msra.mxu2 %v71_v4  ;;  %v121_v35 = vld [vmem:[%s1067_s2 + $0x290] sm:$0xff]  ;;  %v104_v36 = vld [vmem:[%s1067_s2 + $0x208] sm:$0xff]  ;;  %v103_v38 = vld [vmem:[%s1067_s2 + $0x200] sm:$0xff] }
  0x23   :  { %251 = vmatpush.msrb.mxu1 %v134_v59  ;;  %220 = vmatpush.msra.mxu3 %v87_v5  ;;  %v120_v37 = vld [vmem:[%s1067_s2 + $0x288] sm:$0xff]  ;;  %v119_v39 = vld [vmem:[%s1067_s2 + $0x280] sm:$0xff]  ;;  %v37_v42 = vld [vmem:[%s1068_s0 + $0x50] sm:$0xff] }
  0x24   :  { %229 = vmatpush.msrb.mxu0 %v117_v62  ;;  %198 = vmatmul.f32.vlgmr.msra.gmra.mxu2 %v29_v8  ;;  %v31_v40 = vld [vmem:[%s1068_s0 + $0x20] sm:$0xff]  ;;  %v32_v41 = vld [vmem:[%s1068_s0 + $0x28] sm:$0xff]  ;;  %v38_v43 = vld [vmem:[%s1068_s0 + $0x58] sm:$0xff] }
  0x25   :  { %252 = vmatpush.msrb.mxu1 %v133_v63  ;;  %152 = vmatmul.f32.vlgmr.msra.gmra.mxu0 %v27_v9  ;;  %v277_v44 = vld [vmem:[%s1069_s3 + $0x18] sm:$0xff]  ;;  %v276_v45 = vld [vmem:[%s1069_s3 + $0x10] sm:$0xff]  ;;  %v275_v46 = vld [vmem:[%s1069_s3 + $0x8] sm:$0xff] }
  0x26   :  { %230 = vmatpush.msrb.mxu0 %v116_v2  ;;  %221 = vmatmul.f32.vlgmr.msra.gmra.mxu3 %v30_v12  ;;  %v274_v47 = vld [vmem:[%s1069_s3] sm:$0xff] }
  0x27   :  { %253 = vmatpush.msrb.mxu1 %v132_v3  ;;  %298 = vmatpush.msrb.mxu2 %v277_v44  ;;  %v933_v48 = vld [vmem:[%s1070_s6] sm:$0xff] }
  0x28   :  { %231 = vmatpush.msrb.mxu0 %v115_v6  ;;  %175 = vmatmul.f32.vlgmr.msra.gmra.mxu1 %v28_v13  ;;  %v135_v51 = vperm.slane %v933_v48, 0  ;;  %v369_v44 = vld [vmem:[%s1071_s4] sm:$0xff] }
  0x29   :  { %254 = vmatpush.msrb.mxu1 %v131_v7  ;;  %299 = vmatpush.msrb.mxu2 %v276_v45  ;;  %v381_v45 = vld [vmem:[%s1072_s1] sm:$0xff] }
  0x2a   :  { %232 = vmatpush.msrb.mxu0 %v114_v10  ;;  %v278_v10 = vperm.slane %v933_v48, 1 }
  0x2b   :  { %255 = vmatpush.msrb.mxu1 %v130_v11  ;;  %300 = vmatpush.msrb.mxu2 %v275_v46  ;;  %v373_v46 = vld [vmem:[%s1071_s4 + $0x20] sm:$0xff] }
  0x2c   :  { %233 = vmatpush.msrb.mxu0 %v113_v14  ;;  %201 = vmatmul.f32.gmra.mxu2 %v35_v20 }
  0x2d   :  { %256 = vmatpush.msrb.mxu1 %v129_v15  ;;  %155 = vmatmul.f32.gmra.mxu0 %v33_v21 }
  0x2e   :  { %234 = vmatpush.msrb.mxu0 %v112_v16  ;;  %224 = vmatmul.f32.gmra.mxu3 %v36_v24 }
  0x2f   :  { %257 = vmatpush.msrb.mxu1 %v128_v17  ;;  %301 = vmatpush.msrb.mxu2 %v274_v47  ;;  %v552_v17 = vmov 64.0  }
  0x30   :  { %235 = vmatpush.msrb.mxu0 %v111_v18  ;;  %178 = vmatmul.f32.gmra.mxu1 %v34_v25  ;;  %542 = vrcp.f32 %v552_v17 }
  0x31   :  { %258 = vmatpush.msrb.mxu1 %v127_v19 }
  0x32   :  { %236 = vmatpush.msrb.mxu0 %v110_v22 }
  0x33   :  { %259 = vmatpush.msrb.mxu1 %v126_v23 }
  0x34   :  { %237 = vmatpush.msrb.mxu0 %v109_v26 }
  0x35   :  { %260 = vmatpush.msrb.mxu1 %v125_v27 }
  0x36   :  { %238 = vmatpush.msrb.mxu0 %v108_v28  ;;  %v543_v18 = vpop.eup %542 }
  0x37   :  { %261 = vmatpush.msrb.mxu1 %v124_v29  ;;  %v317_v19 = vmul.f32 64.0, %v543_v18  ;;  %vm321_vm2 = vweird.f32 %v543_v18 }
  0x38   :  { %239 = vmatpush.msrb.mxu0 %v107_v30 }
  0x39   :  { %262 = vmatpush.msrb.mxu1 %v123_v31  ;;  %v318_v20 = vsub.f32 1.0, %v317_v19 }
  0x3a   :  { %240 = vmatpush.msrb.mxu0 %v106_v32 }
  0x3b   :  { %263 = vmatpush.msrb.mxu1 %v122_v33  ;;  %v319_v21 = vmul.f32 %v543_v18, %v318_v20 }
  0x3c   :  { %241 = vmatpush.msrb.mxu0 %v105_v34  ;;  %v380_v34 = vld [vmem:[%s1071_s4 + $0x58] sm:$0xff] }
  0x3d   :  { %264 = vmatpush.msrb.mxu1 %v121_v35  ;;  %v320_v22 = vadd.f32 %v543_v18, %v319_v21  ;;  %420 = vmatpush.msra.mxu2 %v380_v34  ;;  %v379_v35 = vld [vmem:[%s1071_s4 + $0x50] sm:$0xff]  ;;  %v507_v34 = vld [vmem:[%s1073_s5 + $0x78] sm:$0xff] }
  0x3e   :  { %242 = vmatpush.msrb.mxu0 %v104_v36  ;;  %v378_v36 = vld [vmem:[%s1071_s4 + $0x48] sm:$0xff] }
  0x3f   :  { %265 = vmatpush.msrb.mxu1 %v120_v37  ;;  %v941_v23 = vsel %vm321_vm2, %v543_v18, %v320_v22  ;;  %421 = vmatpush.msra.mxu2 %v379_v35  ;;  %v372_v37 = vld [vmem:[%s1071_s4 + $0x18] sm:$0xff]  ;;  %v506_v35 = vld [vmem:[%s1073_s5 + $0x70] sm:$0xff] }
  0x40   :  { %243 = vmatpush.msrb.mxu0 %v103_v38  ;;  %v377_v38 = vld [vmem:[%s1071_s4 + $0x40] sm:$0xff]  ;;  %398 = vmatpush.msrb.mxu3 %v372_v37 }
  0x41   :  { %266 = vmatpush.msrb.mxu1 %v119_v39  ;;  %244 = vmatmul.f32.vlgmr.msrb.gmra.mxu0 %v31_v40  ;;  %v376_v39 = vld [vmem:[%s1071_s4 + $0x38] sm:$0xff]  ;;  %v371_v40 = vld [vmem:[%s1071_s4 + $0x10] sm:$0xff] }
  0x42   :  { %267 = vmatmul.f32.vlgmr.msrb.gmra.mxu1 %v32_v41  ;;  %422 = vmatpush.msra.mxu2 %v378_v36  ;;  %v375_v41 = vld [vmem:[%s1071_s4 + $0x30] sm:$0xff] }
  0x43   :  { %399 = vmatpush.msrb.mxu3 %v371_v40  ;;  %v504_v40 = vld [vmem:[%s1073_s5 + $0x60] sm:$0xff] }
  0x44   :  { %423 = vmatpush.msra.mxu2 %v377_v38  ;;  %v505_v38 = vld [vmem:[%s1073_s5 + $0x68] sm:$0xff] }
  0x46   :  { %424 = vmatpush.msra.mxu2 %v376_v39 }
  0x48   :  { %425 = vmatpush.msra.mxu2 %v375_v41  ;;  %v503_v41 = vld [vmem:[%s1073_s5 + $0x58] sm:$0xff] }
  0x49   :  { %247 = vmatmul.f32.gmra.mxu0 %v37_v42  ;;  %v370_v42 = vld [vmem:[%s1071_s4 + $0x8] sm:$0xff] }
  0x4a   :  { %270 = vmatmul.f32.gmra.mxu1 %v38_v43  ;;  %400 = vmatpush.msrb.mxu3 %v370_v42  ;;  %v374_v43 = vld [vmem:[%s1071_s4 + $0x28] sm:$0xff]  ;;  %v502_v42 = vld [vmem:[%s1073_s5 + $0x50] sm:$0xff]  ;;  %s553_s4 = smov 64  }
  0x4b   :  { %426 = vmatpush.msra.mxu2 %v374_v43 }
  0x4c   :  { %401 = vmatpush.msrb.mxu3 %v369_v44 }
  0x4d   :  { %537 = vmatmul.msk.f32.vlgmr.msrb.gmra.mxu3 %vm279_vm0, %v381_v45  ;;  %427 = vmatpush.msra.mxu2 %v373_v46  ;;  %v501_v45 = vld [vmem:[%s1073_s5 + $0x48] sm:$0xff] }
  0x4e   :  { %509 = vmatpush.msra.mxu3 %v507_v34 }
  0x50   :  { %510 = vmatpush.msra.mxu3 %v506_v35 }
  0x52   :  { %511 = vmatpush.msra.mxu3 %v505_v38 }
  0x54   :  { %512 = vmatpush.msra.mxu3 %v504_v40 }
  0x56   :  { %513 = vmatpush.msra.mxu3 %v503_v41 }
  0x58   :  { %514 = vmatpush.msra.mxu3 %v502_v42 }
  0x5a   :  { %515 = vmatpush.msra.mxu3 %v501_v45 }
  0xa2   :  { %v153_v49 = vpop.f32.mrf.mxu0 }
  0xa3   :  { %v154_v52 = vadd.f32 %v153_v49, %v135_v51 }
  0xa5   :  { %v176_v50 = vpop.f32.mrf.mxu1 }
  0xa6   :  { %v177_v56 = vadd.f32 %v176_v50, %v154_v52 }
  0xa7   :  { %v199_v53 = vpop.f32.mrf.mxu2 }
  0xa8   :  { %v200_v58 = vadd.f32 %v199_v53, %v177_v56 }
  0xa9   :  { %v222_v57 = vpop.f32.mrf.mxu3 }
  0xaa   :  { %v156_v54 = vpop.f32.mrf.mxu0  ;;  %v223_v60 = vadd.f32 %v222_v57, %v200_v58 }
  0xab   :  { %v157_v59 = vadd.f32 %v156_v54, %v135_v51 }
  0xad   :  { %v179_v55 = vpop.f32.mrf.mxu1 }
  0xae   :  { %v180_v61 = vadd.f32 %v179_v55, %v157_v59 }
  0xaf   :  { %v202_v62 = vpop.f32.mrf.mxu2 }
  0xb0   :  { %v203_v2 = vadd.f32 %v202_v62, %v180_v61  ;;  %v361_v62 = vperm.slane %v933_v48, 2 }
  0xb1   :  { %v225_v4 = vpop.f32.mrf.mxu3 }
  0xb2   :  { %v226_v5 = vadd.f32 %v225_v4, %v203_v2  ;;  %v364_v2 = vperm.slane %v933_v48, 3 }
  0xbe   :  { %v245_v63 = vpop.f32.mrf.mxu0 }
  0xbf   :  { %v268_v0 = vpop.f32.mrf.mxu1  ;;  %v246_v1 = vadd.f32 %v245_v63, %v223_v60 }
  0xc1   :  { %v269_v3 = vadd.f32 %v268_v0, %v246_v1 }
  0xc3   :  { %535 = vmatmul.msk.f32.vlgmr.msrb.gmra.mxu2 %vm279_vm0, %v269_v3 }
  0xc6   :  { %v248_v6 = vpop.f32.mrf.mxu0 }
  0xc7   :  { %v271_v7 = vpop.f32.mrf.mxu1  ;;  %v249_v8 = vadd.f32 %v248_v6, %v226_v5 }
  0xc9   :  { %v272_v9 = vadd.f32 %v271_v7, %v249_v8 }
  0xcb   :  { %536 = vmatmul.msk.f32.gmra.mxu2 %vm279_vm0, %v272_v9 }
 0x146   :  { %v303_v11 = vpop.f32.mrf.mxu2 }
 0x147   :  { %v304_v12 = vadd.f32 %v303_v11, %v278_v10 }
 0x149   :  { %v310_v13 = vsel %vm309_vm1, %v304_v12, 0.0 }
 0x14a   :  { %311 = vadd.xlane.f32.xlu0 %v310_v13 }
 0x14e   :  { %v306_v14 = vpop.f32.mrf.mxu2 }
 0x14f   :  { %v307_v15 = vadd.f32 %v306_v14, %v278_v10 }
 0x151   :  { %v313_v16 = vsel %vm309_vm1, %v307_v15, 0.0 }
 0x152   :  { %314 = vadd.xlane.f32.xlu0 %v313_v16  ;;  %v403_v16 = vpop.f32.mrf.mxu3 }
 0x1bd   :  { %v312_v24 = vpop.xlane.xlu0 %311 }
 0x1be   :  { %v323_v25 = vmul.f32 %v941_v23, %v312_v24 }
 0x1c0   :  { %v325_v26 = vsub.f32 %v304_v12, %v323_v25 }
 0x1c2   :  { %v327_v27 = vmul.f32 %v325_v26, %v325_v26 }
 0x1c4   :  { %v329_v28 = vsel %vm309_vm1, %v327_v27, 0.0 }
 0x1c5   :  { %330 = vadd.xlane.f32.xlu1 %v329_v28  ;;  %v315_v29 = vpop.xlane.xlu0 %314 }
 0x1c6   :  { %v324_v30 = vmul.f32 %v941_v23, %v315_v29 }
 0x1c8   :  { %v946_v31 = vsub.f32 %v307_v15, %v324_v30  ;;  %v382_v15 = vperm.slane %v933_v48, 4 }
 0x1ca   :  { %v328_v32 = vmul.f32 %v946_v31, %v946_v31  ;;  %v404_v17 = vadd.f32 %v403_v16, %v382_v15 }
 0x1cc   :  { %v332_v33 = vsel %vm309_vm1, %v328_v32, 0.0 }
 0x1cd   :  { %333 = vadd.xlane.f32.xlu1 %v332_v33 }
 0x238   :  { %v331_v47 = vpop.xlane.xlu1 %330 }
 0x239   :  { %v335_v49 = vmul.f32 %v331_v47, %v941_v23 }
 0x23b   :  { %v337_v50 = vadd.f32 1e-05, %v335_v49  ;;  %v500_v49 = vld [vmem:[%s1073_s5 + $0x40] sm:$0xff] }
 0x23c   :  { %516 = vmatpush.msra.mxu3 %v500_v49 }
 0x23d   :  { %544 = vrsqrt.f32 %v337_v50  ;;  %vm345_vm4 = vweird.f32 %v337_v50 }
 0x240   :  { %v334_v51 = vpop.xlane.xlu1 %333 }
 0x241   :  { %v336_v52 = vmul.f32 %v334_v51, %v941_v23  ;;  %v499_v51 = vld [vmem:[%s1073_s5 + $0x38] sm:$0xff] }
 0x242   :  { %517 = vmatpush.msra.mxu3 %v499_v51 }
 0x243   :  { %v545_v53 = vpop.eup %544  ;;  %v338_v54 = vadd.f32 1e-05, %v336_v52 }
 0x244   :  { %v340_v55 = vmul.f32 %v545_v53, %v337_v50  ;;  %vm346_vm3 = vweird.f32 %v545_v53 }
 0x245   :  { %546 = vrsqrt.f32 %v338_v54  ;;  %vm347_vm5 = vmor %vm345_vm4, %vm346_vm3  ;;  %vm355_vm7 = vweird.f32 %v338_v54 }
 0x246   :  { %v341_v56 = vmul.f32 %v545_v53, %v340_v55 }
 0x248   :  { %v342_v57 = vmul.f32 0.5, %v341_v56 }
 0x24a   :  { %v343_v58 = vsub.f32 1.5, %v342_v57  ;;  %v496_v57 = vld [vmem:[%s1073_s5 + $0x20] sm:$0xff] }
 0x24b   :  { %v547_v59 = vpop.eup %546 }
 0x24c   :  { %v344_v60 = vmul.f32 %v545_v53, %v343_v58  ;;  %v350_v61 = vmul.f32 %v547_v59, %v338_v54  ;;  %vm356_vm6 = vweird.f32 %v547_v59  ;;  %v497_v54 = vld [vmem:[%s1073_s5 + $0x28] sm:$0xff] }
 0x24d   :  { %vm357_vm8 = vmor %vm355_vm7, %vm356_vm6 }
 0x24e   :  { %v348_v63 = vsel %vm347_vm5, %v545_v53, %v344_v60  ;;  %v351_v0 = vmul.f32 %v547_v59, %v350_v61  ;;  %v479_v60 = vperm.slane %v933_v48, 5  ;;  %v495_v61 = vld [vmem:[%s1073_s5 + $0x18] sm:$0xff] }
 0x24f   :  { %v359_v1 = vmul.f32 %v348_v63, %v325_v26 }
 0x250   :  { %v352_v3 = vmul.f32 0.5, %v351_v0 }
 0x251   :  { %v362_v4 = vmul.f32 %v361_v62, %v359_v1  ;;  %v482_v1 = vperm.slane %v933_v48, 6 }
 0x252   :  { %v353_v5 = vsub.f32 1.5, %v352_v3 }
 0x253   :  { %v365_v6 = vadd.f32 %v364_v2, %v362_v4 }
 0x254   :  { %v354_v7 = vmul.f32 %v547_v59, %v353_v5  ;;  %v493_v5 = vld [vmem:[%s1073_s5 + $0x8] sm:$0xff] }
 0x255   :  { %v367_v8 = vmax.f32 %v365_v6, 0.0 }
 0x256   :  { %v358_v9 = vsel %vm357_vm8, %v547_v59, %v354_v7 }
 0x257   :  { %538 = vmatmul.msk.f32.vlgmr.msra.gmra.mxu2 %vm309_vm1, %v367_v8  ;;  %v360_v10 = vmul.f32 %v358_v9, %v946_v31 }
 0x259   :  { %v363_v11 = vmul.f32 %v361_v62, %v360_v10 }
 0x25b   :  { %v366_v12 = vadd.f32 %v364_v2, %v363_v11  ;;  %v494_v2 = vld [vmem:[%s1073_s5 + $0x10] sm:$0xff] }
 0x25d   :  { %v368_v13 = vmax.f32 %v366_v12, 0.0 }
 0x25f   :  { %539 = vmatmul.msk.f32.gmra.mxu2 %vm309_vm1, %v368_v13 }
 0x2da   :  { %v429_v14 = vpop.f32.mrf.mxu2 }
 0x2db   :  { %v430_v21 = vadd.f32 %v429_v14, %v404_v17  ;;  %v492_v14 = vld [vmem:[%s1073_s5] sm:$0xff] }
 0x2dd   :  { %v435_v22 = vsel %vm309_vm1, %v430_v21, 0.0 }
 0x2e2   :  { %v432_v18 = vpop.f32.mrf.mxu2 }
 0x2e3   :  { %v433_v19 = vadd.f32 %v432_v18, %v404_v17  ;;  %v508_v18 = vperm.slane %v933_v48, 7 }
 0x2e5   :  { %v438_v20 = vsel %vm309_vm1, %v433_v19, 0.0 }
 0x2e6   :  { %439 = vadd.xlane.f32.xlu2 %v438_v20 }
 0x2ee   :  { %436 = vadd.xlane.f32.xlu2 %v435_v22 }
 0x359   :  { %v440_v24 = vpop.xlane.xlu2 %439 }
 0x35a   :  { %v442_v25 = vmul.f32 %v440_v24, %v941_v23 }
 0x35c   :  { %v444_v26 = vsub.f32 %v433_v19, %v442_v25 }
 0x35e   :  { %v446_v27 = vmul.f32 %v444_v26, %v444_v26 }
 0x360   :  { %v450_v28 = vsel %vm309_vm1, %v446_v27, 0.0 }
 0x361   :  { %451 = vadd.xlane.f32.xlu0 %v450_v28  ;;  %v437_v29 = vpop.xlane.xlu2 %436 }
 0x362   :  { %v441_v30 = vmul.f32 %v437_v29, %v941_v23 }
 0x364   :  { %v1004_v31 = vsub.f32 %v430_v21, %v441_v30 }
 0x366   :  { %v445_v32 = vmul.f32 %v1004_v31, %v1004_v31 }
 0x368   :  { %v447_v33 = vsel %vm309_vm1, %v445_v32, 0.0 }
 0x369   :  { %448 = vadd.xlane.f32.xlu1 %v447_v33 }
 0x3d4   :  { %v452_v36 = vpop.xlane.xlu0 %451 }
 0x3d5   :  { %v454_v37 = vmul.f32 %v452_v36, %v941_v23 }
 0x3d7   :  { %v456_v39 = vadd.f32 1e-05, %v454_v37 }
 0x3d9   :  { %548 = vrsqrt.f32 %v456_v39  ;;  %vm473_vm10 = vweird.f32 %v456_v39 }
 0x3dc   :  { %v449_v43 = vpop.xlane.xlu1 %448 }
 0x3dd   :  { %v453_v44 = vmul.f32 %v449_v43, %v941_v23  ;;  %v498_v23 = vld [vmem:[%s1073_s5 + $0x30] sm:$0xff] }
 0x3de   :  { %518 = vmatpush.msra.mxu3 %v498_v23 }
 0x3df   :  { %v549_v46 = vpop.eup %548  ;;  %v455_v47 = vadd.f32 1e-05, %v453_v44 }
 0x3e0   :  { %v468_v50 = vmul.f32 %v549_v46, %v456_v39  ;;  %vm474_vm9 = vweird.f32 %v549_v46  ;;  %519 = vmatpush.msra.mxu3 %v497_v54 }
 0x3e1   :  { %550 = vrsqrt.f32 %v455_v47  ;;  %vm475_vm11 = vmor %vm473_vm10, %vm474_vm9  ;;  %vm463_vm13 = vweird.f32 %v455_v47 }
 0x3e2   :  { %v469_v52 = vmul.f32 %v549_v46, %v468_v50  ;;  %520 = vmatpush.msra.mxu3 %v496_v57 }
 0x3e4   :  { %v470_v53 = vmul.f32 0.5, %v469_v52  ;;  %521 = vmatpush.msra.mxu3 %v495_v61 }
 0x3e6   :  { %v471_v55 = vsub.f32 1.5, %v470_v53  ;;  %522 = vmatpush.msra.mxu3 %v494_v2 }
 0x3e7   :  { %v551_v56 = vpop.eup %550 }
 0x3e8   :  { %v472_v58 = vmul.f32 %v549_v46, %v471_v55  ;;  %v458_v59 = vmul.f32 %v551_v56, %v455_v47  ;;  %vm464_vm12 = vweird.f32 %v551_v56  ;;  %523 = vmatpush.msra.mxu3 %v493_v5 }
 0x3e9   :  { %vm465_vm14 = vmor %vm463_vm13, %vm464_vm12 }
 0x3ea   :  { %v476_v62 = vsel %vm475_vm11, %v549_v46, %v472_v58  ;;  %v459_v63 = vmul.f32 %v551_v56, %v458_v59  ;;  %524 = vmatpush.msra.mxu3 %v492_v14 }
 0x3eb   :  { %v478_v0 = vmul.f32 %v476_v62, %v444_v26 }
 0x3ec   :  { %v460_v3 = vmul.f32 0.5, %v459_v63 }
 0x3ed   :  { %v481_v4 = vmul.f32 %v479_v60, %v478_v0 }
 0x3ee   :  { %v461_v6 = vsub.f32 1.5, %v460_v3 }
 0x3ef   :  { %v484_v7 = vadd.f32 %v482_v1, %v481_v4 }
 0x3f0   :  { %v462_v8 = vmul.f32 %v551_v56, %v461_v6 }
 0x3f1   :  { %v486_v9 = vmax.f32 %v484_v7, 0.0 }
 0x3f2   :  { %v466_v10 = vsel %vm465_vm14, %v551_v56, %v462_v8 }
 0x3f3   :  { %v477_v11 = vmul.f32 %v466_v10, %v1004_v31  ;;  %488 = vrot.lane.b32.xlu2 %v486_v9, %s553_s4 }
 0x3f5   :  { %v480_v12 = vmul.f32 %v479_v60, %v477_v11 }
 0x3f7   :  { %v483_v13 = vadd.f32 %v482_v1, %v480_v12 }
 0x3f9   :  { %v485_v15 = vmax.f32 %v483_v13, 0.0 }
 0x44d   :  { %v489_v16 = vpop.permute.xlu2 %488 }
 0x44e   :  { %v491_v17 = vsel %vm309_vm1, %v485_v15, %v489_v16 }
 0x44f   :  { %525 = vmatmul.f32.vlgmr.msra.gmra.mxu3 %v491_v17 }
 0x4d2   :  { %v526_v19 = vpop.f32.mrf.mxu3 }
 0x4d3   :  { %v527_v20 = vadd.f32 %v526_v19, %v508_v18 }
 0x4d5   :  { %530 = vst.msk [vmem:[%s1074_s7] sm:$0xff] %vm529_vm15, %v527_v20 }

</bundles_post_ra>
